<compile_context>
chip_gen: v7x
topology: tpu7x:2x2x1
jax: 0.10.0
libtpu: 0.0.40
codegen_flags: <defaults>
</compile_context>

<pallas_src>
import functools

import numpy as np

import jax
import jax.numpy as jnp
from jax.experimental import pallas as pl
from jax.experimental.pallas import tpu as pltpu


def _round_up(x, m):
    return ((x + m - 1) // m) * m


# ---------------------------------------------------------------------------
# Tiled linear projection kernel: x (N, K) @ w(M, K)^T -> (N, M)
# (weight stays in PyTorch nn.Linear layout; MXU inputs optionally bf16,
#  accumulation always f32)
# ---------------------------------------------------------------------------
def _linear_kernel(x_ref, w_ref, o_ref, acc_ref, *, mm_dtype):
    @pl.when(pl.program_id(2) == 0)
    def _init():
        acc_ref[...] = jnp.zeros_like(acc_ref)

    acc_ref[...] += jax.lax.dot_general(
        x_ref[...].astype(mm_dtype), w_ref[...].astype(mm_dtype),
        (((1,), (1,)), ((), ())), preferred_element_type=jnp.float32)

    @pl.when(pl.program_id(2) == pl.num_programs(2) - 1)
    def _store():
        o_ref[...] = acc_ref[...].astype(o_ref.dtype)


def _linear(x2d, w, *, out_dtype=jnp.float32, mm_dtype=jnp.float32,
            tm=256, tn=256, tk=512):
    """x2d: (N, K); w: (M, K) PyTorch layout.  Returns x2d @ w.T in out_dtype."""
    n, k = x2d.shape
    m = w.shape[0]
    tm = min(tm, n)                              # < n -> multiple of 8; == n -> full dim
    tn = min(tn, m)
    # K tile: 128-aligned default (matches v5e 4x128 MXU too); only tile K when
    # it divides evenly, otherwise contract the whole K in one block.
    tk = tk if (k % tk == 0 and tk <= k) else k
    grid = (pl.cdiv(n, tm), pl.cdiv(m, tn), k // tk)
    return pl.pallas_call(
        functools.partial(_linear_kernel, mm_dtype=mm_dtype),
        grid=grid,
        in_specs=[
            pl.BlockSpec((tm, tk), lambda i, j, kk: (i, kk)),
            pl.BlockSpec((tn, tk), lambda i, j, kk: (j, kk)),
        ],
        out_specs=pl.BlockSpec((tm, tn), lambda i, j, kk: (i, j)),
        out_shape=jax.ShapeDtypeStruct((n, m), out_dtype),
        scratch_shapes=[pltpu.VMEM((tm, tn), jnp.float32)],
        compiler_params=pltpu.CompilerParams(
            dimension_semantics=("parallel", "parallel", "arbitrary")),
    )(x2d, w)


# ---------------------------------------------------------------------------
# pltpu.roll sign-convention probe (cached).
#
# We need a per-row LEFT rotation by (c - i) along the lane axis.  The exact
# (shift, stride) parameterisation depends on the roll convention, so a tiny
# one-off probe kernel validates it against numpy; if no candidate matches the
# kernel falls back to an exact (but O(cs)) slice-based shift.
# ---------------------------------------------------------------------------
def _roll_params(mode, c, n):
    if mode == 0:            # np.roll convention, non-negative base shift
        return (n - c) % n, 1
    if mode == 1:            # np.roll convention, negative base shift
        return -c, 1
    if mode == 2:            # inverse convention, negative stride
        return c % n, -1
    return c % n, n - 1      # inverse convention, non-negative stride


_ROLL_MODE_CACHE = []


def _probe_roll_mode():
    if _ROLL_MODE_CACHE:
        return _ROLL_MODE_CACHE[0]
    rows, n, c = 8, 128, 5
    x = np.arange(rows * n, dtype=np.float32).reshape(rows, n)
    # want[i, j] = x[i, (j + c - i) % n]   (left rotation of row i by c - i)
    want = np.stack([np.roll(x[i], i - c) for i in range(rows)])
    mode_found = None
    for mode in range(4):
        shift, stride = _roll_params(mode, c, n)

        def kern(x_ref, o_ref, _shift=shift, _stride=stride):
            o_ref[...] = pltpu.roll(x_ref[...], _shift, 1,
                                    stride=_stride, stride_axis=0)

        try:
            got = pl.pallas_call(
                kern, out_shape=jax.ShapeDtypeStruct((rows, n), jnp.float32))(x)
            if np.array_equal(np.asarray(jax.block_until_ready(got)), want):
                mode_found = mode
                break
        except Exception:    # lowering rejected this parameterisation
            continue
    _ROLL_MODE_CACHE.append(mode_found)
    return mode_found


# ---------------------------------------------------------------------------
# Exact Transformer-XL relative shift of a (cs, total) score tile:
#   out[i, j] = flatten(concat([0, pos_raw], -1))[cs + i*total + j]
#             = concat(padded[i], padded[i+1])[j + cs - i]
# Implemented as a single strided XLU rotate (hidden under the MXU) when the
# roll convention is known; otherwise per-row static slices (exact fallback).
# ---------------------------------------------------------------------------
def _rel_shift(pos_raw, cs, total, roll_mode):
    dt = pos_raw.dtype
    padded = jnp.concatenate([jnp.zeros((cs, 1), dt), pos_raw], axis=-1)       # (cs, total+1)
    nxt = jnp.concatenate([padded[1:], jnp.zeros((1, total + 1), dt)], axis=0)  # row i+1
    width = 2 * (total + 1)
    if roll_mode is not None:
        n_pad = _round_up(width, 128)        # lane-friendly width; never read past `width`
        parts = [padded, nxt]
        if n_pad > width:
            parts.append(jnp.zeros((cs, n_pad - width), dt))
        a = jnp.concatenate(parts, axis=-1)                                     # (cs, n_pad)
        shift, stride = _roll_params(roll_mode, cs, n_pad)
        # single strided rotate: row i is rotated left by (cs - i)
        return pltpu.roll(a, shift, 1, stride=stride, stride_axis=0)[:, :total]
    # Fallback: exact but O(cs) unaligned lane slices (only if the probe failed).
    a = jnp.concatenate([padded, nxt], axis=-1)
    rows = [a[i:i + 1, cs - i: cs - i + total] for i in range(cs)]
    return rows[0] if cs == 1 else jnp.concatenate(rows, axis=0)


# ---------------------------------------------------------------------------
# Fused attention + output-projection kernel.  One (batch, head) grid step:
#   q: (cs, d), k/v/p: (total, d), u/vb: (1, d), bias: (cs, total) 0/-inf,
#   wo: (d, d_in) slice of w_out.  acc: resident (cs, d_in) f32 accumulator,
#   stored to o (cs, d_in) at the last head.
# ---------------------------------------------------------------------------
def _attn_kernel(q_ref, k_ref, v_ref, p_ref, u_ref, vb_ref, bias_ref, wo_ref,
                 o_ref, acc_ref, *, scale, roll_mode, approx_recip):
    h = pl.program_id(1)

    @pl.when(h == 0)
    def _init():
        acc_ref[...] = jnp.zeros_like(acc_ref)

    cs, d = q_ref.shape
    total = k_ref.shape[0]
    mm_dtype = k_ref.dtype

    # fold 1/sqrt(d) into the (cs, d) queries (mask bias -inf is scale-invariant)
    q = q_ref[...].astype(jnp.float32)
    qc = ((q + u_ref[...]) * scale).astype(mm_dtype)
    qp = ((q + vb_ref[...]) * scale).astype(mm_dtype)

    content = jax.lax.dot_general(qc, k_ref[...], (((1,), (1,)), ((), ())),
                                  preferred_element_type=jnp.float32)
    pos_raw = jax.lax.dot_general(qp, p_ref[...], (((1,), (1,)), ((), ())),
                                  preferred_element_type=jnp.float32)
    scores = content + _rel_shift(pos_raw, cs, total, roll_mode) + bias_ref[...]

    # stable softmax with deferred normalisation
    m = jnp.max(scores, axis=-1, keepdims=True)
    e = jnp.exp(scores - m)
    s = jnp.sum(e, axis=-1, keepdims=True)                       # (cs, 1)
    pv = jnp.dot(e.astype(mm_dtype), v_ref[...],
                 preferred_element_type=jnp.float32)             # (cs, d)
    inv = pl.reciprocal(s, approx=True) if approx_recip else pl.reciprocal(s)
    pv = pv * inv

    # fused output projection: accumulate this head's (cs, d_in) contribution
    acc_ref[...] += jnp.dot(pv.astype(mm_dtype), wo_ref[...],
                            preferred_element_type=jnp.float32)

    @pl.when(h == pl.num_programs(1) - 1)
    def _store():
        o_ref[...] = acc_ref[...].astype(o_ref.dtype)


def _attn_vmem_limit(cs, total, d, d_in, mm_bytes):
    n_pad = _round_up(2 * (total + 1), 128)
    per_head = (cs * d + 3 * total * d + d * d_in) * mm_bytes + 2 * d * 4
    resident = (cs * total + cs * d_in) * 4
    transients = (6 * cs * total + 3 * cs * n_pad) * 4
    est = 2 * (per_head + resident) + cs * d_in * 4 + transients
    return int(min(max(2 * est, 32 * 2 ** 20), 64 * 2 ** 20))


# ---------------------------------------------------------------------------
# Forward wrapper
# ---------------------------------------------------------------------------
def multihead_attention_xl(input_, pos_embs, memory, u, v, params, mask=None,
                           *, precise=False):
    """MultiHeadAttentionXL.forward (eval mode: dropouts are identity).

    input_: (cs, bs, d_in); pos_embs: (cs+ps, 1, d_in); memory: (ps, bs, d_in)
    u, v: (H, d); mask: (cs, cs+ps, 1) or None (batch/head-invariant).
    params: PyTorch nn.Linear weights, (out_features, in_features) layout.
    precise=False -> bf16 MXU inputs with f32 accumulation (fast path).
    """
    w_kv, w_q, w_p, w_out = params["w_kv"], params["w_q"], params["w_p"], params["w_out"]
    cs, bs, d_in = input_.shape
    ps = memory.shape[0]
    total = cs + ps
    H, d = u.shape
    scale = 1.0 / (d ** 0.5)
    mm_dtype = jnp.float32 if precise else jnp.bfloat16
    mm_bytes = 4 if precise else 2

    # ---- projections (tiled matmul kernels; no wrapper-side w.T) ------------
    iwm = jnp.concatenate([memory, input_], axis=0)                    # (total, bs, d_in)
    x_q = jnp.transpose(input_, (1, 0, 2)).reshape(bs * cs, d_in)
    x_kv = jnp.transpose(iwm, (1, 0, 2)).reshape(bs * total, d_in)
    x_p = pos_embs.reshape(total, d_in)                                # pos bs-dim is 1

    q = _linear(x_q, w_q, out_dtype=mm_dtype, mm_dtype=mm_dtype)       # (bs*cs, H*d)
    kv = _linear(x_kv, w_kv, out_dtype=mm_dtype, mm_dtype=mm_dtype)    # (bs*total, 2*H*d)
    p = _linear(x_p, w_p, out_dtype=mm_dtype, mm_dtype=mm_dtype)       # (total, H*d)

    # ---- head-major layouts so each (batch, head) grid step is a whole tile -
    q_bh = q.reshape(bs, cs, H, d).transpose(0, 2, 1, 3)               # (bs,H,cs,d)
    kv = kv.reshape(bs, total, 2, H, d)
    k_bh = kv[:, :, 0].transpose(0, 2, 1, 3)                           # (bs,H,total,d)
    v_bh = kv[:, :, 1].transpose(0, 2, 1, 3)                           # (bs,H,total,d)
    p_h = p.reshape(total, H, d).transpose(1, 0, 2)                    # (H,total,d)
    u3 = u.reshape(H, 1, d).astype(jnp.float32)
    vb3 = v.reshape(H, 1, d).astype(jnp.float32)
    wo_h = jnp.transpose(w_out).reshape(H, d, d_in).astype(mm_dtype)   # (H,d,d_in)

    # additive 0 / -inf mask bias (batch/head invariant, resident across grid)
    # TODO(synk): a mask with a real batch dimension would need a per-batch bias.
    if mask is None:
        bias = jnp.zeros((cs, total), jnp.float32)
    else:
        m2 = jnp.asarray(mask).reshape(cs, total)
        bias = jnp.where(m2 != 0, -jnp.inf, 0.0).astype(jnp.float32)

    roll_mode = _probe_roll_mode()

    kernel = functools.partial(_attn_kernel, scale=scale, roll_mode=roll_mode,
                               approx_recip=not precise)
    # TODO(synk): for very long `total`, tile the KV axis flash-style (online
    # softmax) instead of holding whole (total, d) K/V head blocks in VMEM.
    out_bm = pl.pallas_call(
        kernel,
        grid=(bs, H),
        in_specs=[
            pl.BlockSpec((None, None, cs, d), lambda b, h: (b, h, 0, 0)),     # q
            pl.BlockSpec((None, None, total, d), lambda b, h: (b, h, 0, 0)),  # k
            pl.BlockSpec((None, None, total, d), lambda b, h: (b, h, 0, 0)),  # v
            pl.BlockSpec((None, total, d), lambda b, h: (h, 0, 0)),           # p
            pl.BlockSpec((None, 1, d), lambda b, h: (h, 0, 0)),               # u
            pl.BlockSpec((None, 1, d), lambda b, h: (h, 0, 0)),               # v bias
            pl.BlockSpec((cs, total), lambda b, h: (0, 0)),                   # mask bias
            pl.BlockSpec((None, d, d_in), lambda b, h: (h, 0, 0)),            # w_out slice
        ],
        out_specs=pl.BlockSpec((None, cs, d_in), lambda b, h: (b, 0, 0)),
        out_shape=jax.ShapeDtypeStruct((bs, cs, d_in), jnp.float32),
        scratch_shapes=[pltpu.VMEM((cs, d_in), jnp.float32)],
        compiler_params=pltpu.CompilerParams(
            dimension_semantics=("parallel", "arbitrary"),
            vmem_limit_bytes=_attn_vmem_limit(cs, total, d, d_in, mm_bytes)),
    )(q_bh, k_bh, v_bh, p_h, u3, vb3, bias, wo_h)

    # TODO(synk): nn.Dropout (dropa/dropo) omitted -- eval/inference (identity).
    return jnp.transpose(out_bm, (1, 0, 2))                            # (cs, bs, d_in)


# ---------------------------------------------------------------------------
# Pure-JAX reference (direct transcription of the PyTorch forward)
# ---------------------------------------------------------------------------
def reference_forward(input_, pos_embs, memory, u, v, params, mask):
    H, d = u.shape
    cs, bs, _ = input_.shape
    ps = memory.shape[0]
    total = cs + ps
    scale = 1.0 / (d ** 0.5)
    iwm = jnp.concatenate([memory, input_], axis=0)
    kv = iwm @ params["w_kv"].T
    k_t, v_t = jnp.split(kv, 2, axis=-1)
    q_t = input_ @ params["w_q"].T
    content = jnp.einsum("ibhd,jbhd->ijbh", q_t.reshape(cs, bs, H, d) + u,
                         k_t.reshape(total, bs, H, d))
    p_t = pos_embs @ params["w_p"].T
    pos = jnp.einsum("ibhd,jhd->ijbh", q_t.reshape(cs, bs, H, d) + v,
                     p_t.reshape(total, H, d))
    zero = jnp.zeros((cs, 1, bs, H), pos.dtype)
    pos = jnp.concatenate([zero, pos], axis=1).reshape(cs * (total + 1), bs, H)[cs:]
    pos = pos.reshape(cs, total, bs, H)
    attn = content + pos
    if mask is not None:
        attn = jnp.where(mask[..., None], -jnp.inf, attn)
    attn = jax.nn.softmax(attn * scale, axis=1)
    awv = jnp.einsum("ijbh,jbhd->ibhd", attn, v_t.reshape(total, bs, H, d))
    awv = awv.reshape(cs, bs, H * d)
    return awv @ params["w_out"].T


# ---------------------------------------------------------------------------
if __name__ == "__main__":
    key = jax.random.PRNGKey(0)
    d_input, d_inner, n_heads = 16, 8, 4
    cs, ps, bs = 8, 8, 2
    total = cs + ps

    keys = jax.random.split(key, 9)

    def uinit(k, shape, fan_in):
        bound = 1.0 / (fan_in ** 0.5)
        return jax.random.uniform(k, shape, jnp.float32, -bound, bound)

    # nn.Linear weights are stored (out_features, in_features), bias=False
    params = {
        "w_kv": uinit(keys[0], (d_inner * n_heads * 2, d_input), d_input),
        "w_q": uinit(keys[1], (d_inner * n_heads, d_input), d_input),
        "w_p": uinit(keys[2], (d_inner * n_heads, d_input), d_input),
        "w_out": uinit(keys[3], (d_input, d_inner * n_heads), d_inner * n_heads),
    }
    u = 0.1 * jax.random.normal(keys[4], (n_heads, d_inner), jnp.float32)
    v = 0.1 * jax.random.normal(keys[5], (n_heads, d_inner), jnp.float32)

    input_ = jax.random.normal(keys[6], (cs, bs, d_input), jnp.float32)
    memory = jax.random.normal(keys[7], (ps, bs, d_input), jnp.float32)
    pos_embs = jax.random.normal(keys[8], (total, 1, d_input), jnp.float32)

    # causal-style mask: position i may not attend to future positions j > ps + i
    i_idx = jnp.arange(cs)[:, None]
    j_idx = jnp.arange(total)[None, :]
    mask = (j_idx > (ps + i_idx))[..., None]                 # (cs, total, 1) bool

    ref = reference_forward(input_, pos_embs, memory, u, v, params, mask)

    # 1) precise mode (f32 MXU inputs): tight agreement with the f32 reference.
    out_f32 = multihead_attention_xl(input_, pos_embs, memory, u, v, params, mask,
                                     precise=True)
    out_f32 = jax.block_until_ready(out_f32)
    assert out_f32.shape == (cs, bs, d_input)
    err32 = float(jnp.max(jnp.abs(out_f32 - ref)))
    assert jnp.allclose(out_f32, ref, rtol=1e-4, atol=1e-4), f"f32 max abs err {err32}"

    # 2) default fast mode: bf16 MXU inputs, f32 accumulation (looser tolerance).
    out_bf16 = multihead_attention_xl(input_, pos_embs, memory, u, v, params, mask)
    out_bf16 = jax.block_until_ready(out_bf16)
    assert out_bf16.shape == (cs, bs, d_input)
    err16 = float(jnp.max(jnp.abs(out_bf16 - ref)))
    assert jnp.allclose(out_bf16, ref, rtol=5e-2, atol=5e-2), f"bf16 max abs err {err16}"

    print("KERNEL_OK")
</pallas_src>

<mosaic_0001>
module attributes {stable_mosaic.version = 11 : i64} {
  func.func @_linear_kernel(%arg0: i32, %arg1: i32, %arg2: i32, %arg3: memref<16x16xf32, #tpu.memory_space<vmem>>, %arg4: memref<32x16xf32, #tpu.memory_space<vmem>>, %arg5: memref<16x32xf32, #tpu.memory_space<vmem>>, %arg6: memref<16x32xf32, #tpu.memory_space<vmem>>) attributes {dimension_semantics = [#tpu.dimension_semantics<parallel>, #tpu.dimension_semantics<parallel>, #tpu.dimension_semantics<arbitrary>], iteration_bounds = array<i64: 1, 1, 1>, scalar_prefetch = 0 : i64, scratch_operands = 1 : i64, tpu.core_type = #tpu.core_type<tc>, window_params = [{transform_indices = @transform_0, window_bounds = array<i64: 16, 16>}, {transform_indices = @transform_1, window_bounds = array<i64: 32, 16>}, {transform_indices = @transform_2, window_bounds = array<i64: 16, 32>}]} {
    %c0_i32 = arith.constant 0 : i32
    %0 = arith.cmpi eq, %arg2, %c0_i32 : i32
    %1 = arith.extui %0 : i1 to i32
    %c0_i32_0 = arith.constant 0 : i32
    %2 = arith.cmpi ne, %1, %c0_i32_0 : i32
    scf.if %2 {
      %cst_10 = arith.constant 0.000000e+00 : f32
      %12 = vector.broadcast %cst_10 : f32 to vector<16x32xf32>
      %c0_11 = arith.constant 0 : index
      %c0_12 = arith.constant 0 : index
      %13 = vector.load %arg6[%c0_11, %c0_12] : memref<16x32xf32, #tpu.memory_space<vmem>>, vector<16x32xf32>
      tpu.vector_store %arg6[%c0_11, %c0_12], %12 {strides = array<i32>} : memref<16x32xf32, #tpu.memory_space<vmem>>, vector<16x32xf32>,
    } else {
    }
    %c0 = arith.constant 0 : index
    %c0_1 = arith.constant 0 : index
    %3 = vector.load %arg6[%c0, %c0_1] : memref<16x32xf32, #tpu.memory_space<vmem>>, vector<16x32xf32>
    %c0_2 = arith.constant 0 : index
    %c0_3 = arith.constant 0 : index
    %4 = vector.load %arg3[%c0_2, %c0_3] : memref<16x16xf32, #tpu.memory_space<vmem>>, vector<16x16xf32>
    %c0_4 = arith.constant 0 : index
    %c0_5 = arith.constant 0 : index
    %5 = vector.load %arg4[%c0_4, %c0_5] : memref<32x16xf32, #tpu.memory_space<vmem>>, vector<32x16xf32>
    %cst = arith.constant dense<0.000000e+00> : vector<16x32xf32>
    %6 = tpu.matmul %4, %5, %cst {dimension_numbers = #tpu.dot_dimension_numbers<[1], [1], [0], [0], [0, 0, 1, 0], [], []>} : vector<16x16xf32>, vector<32x16xf32>, vector<16x32xf32> -> vector<16x32xf32>
    %7 = arith.addf %3, %6 : vector<16x32xf32>
    %c0_6 = arith.constant 0 : index
    %c0_7 = arith.constant 0 : index
    %8 = vector.load %arg6[%c0_6, %c0_7] : memref<16x32xf32, #tpu.memory_space<vmem>>, vector<16x32xf32>
    tpu.vector_store %arg6[%c0_6, %c0_7], %7 {strides = array<i32>} : memref<16x32xf32, #tpu.memory_space<vmem>>, vector<16x32xf32>,
    %c0_i32_8 = arith.constant 0 : i32
    %9 = arith.cmpi eq, %arg2, %c0_i32_8 : i32
    %10 = arith.extui %9 : i1 to i32
    %c0_i32_9 = arith.constant 0 : i32
    %11 = arith.cmpi ne, %10, %c0_i32_9 : i32
    scf.if %11 {
      %c0_10 = arith.constant 0 : index
      %c0_11 = arith.constant 0 : index
      %12 = vector.load %arg6[%c0_10, %c0_11] : memref<16x32xf32, #tpu.memory_space<vmem>>, vector<16x32xf32>
      %c0_12 = arith.constant 0 : index
      %c0_13 = arith.constant 0 : index
      %13 = vector.load %arg5[%c0_12, %c0_13] : memref<16x32xf32, #tpu.memory_space<vmem>>, vector<16x32xf32>
      tpu.vector_store %arg5[%c0_12, %c0_13], %12 {strides = array<i32>} : memref<16x32xf32, #tpu.memory_space<vmem>>, vector<16x32xf32>,
    } else {
    }
    return
  }
  func.func @transform_0(%arg0: i32, %arg1: i32, %arg2: i32) -> (i32, i32) {
    %c0_i32 = arith.constant 0 : i32
    return %arg0, %arg2 : i32, i32
  }
  func.func @transform_1(%arg0: i32, %arg1: i32, %arg2: i32) -> (i32, i32) {
    %c0_i32 = arith.constant 0 : i32
    return %arg1, %arg2 : i32, i32
  }
  func.func @transform_2(%arg0: i32, %arg1: i32, %arg2: i32) -> (i32, i32) {
    %c0_i32 = arith.constant 0 : i32
    return %arg0, %arg1 : i32, i32
  }
}

</mosaic_0001>

<bundles_post_ra>
// kernel: tpu_custom_call.1
= control target key start
LH: loop header
LB: loop body
LE: loop exit
PB: predicated region body
PF: predicated region fallthrough
CT: control target
= control target key end

     0   :  { %vm27_vm0 = vcmask 130048   ;;  %vm16_vm1 = vcmask 261120   ;;  %v212_v6 = vmov 0.0   ;;  %s271_s0 = inlined_call_operand.vmem [shape: f32[16,16], index: 0, kind: input, shape index: {}]   ;;  %s272_s1 = inlined_call_operand.vmem [shape: f32[32,16], index: 1, kind: input, shape index: {}]   ;;  %s273_s2 = inlined_call_operand.hbm [shape: f32[16,32], index: 2, kind: output, shape index: {}]  }
   0x1   :  { %v23_v0 = vld [vmem:[%s272_s1] sm:$0xff]  ;;  %v24_v1 = vld [vmem:[%s272_s1 + $0x8] sm:$0xff]  ;;  %v25_v2 = vld [vmem:[%s272_s1 + $0x10] sm:$0xff]  ;;  %18 = vst.msk [vmem:[#allocation2 + $0x8] sm:$0xff] %vm16_vm1, %v212_v6 }
   0x2   :  { %v172_v3 = vpack.c.bf16 %v24_v1, %v23_v0  ;;  %vm173_vm2 = vmpackc.low %vm27_vm0, %vm27_vm0  ;;  %v26_v4 = vld [vmem:[%s272_s1 + $0x18] sm:$0xff]  ;;  %v21_v5 = vld [vmem:[%s271_s0] sm:$0xff]  ;;  %17 = vst.msk [vmem:[#allocation2] sm:$0xff] %vm16_vm1, %v212_v6 }
   0x3   :  { %v178_v7 = vpack.c.bf16 %v26_v4, %v25_v2  ;;  %169 = vmatprep.mubr.msk.f32.mxu0 %vm27_vm0, %v21_v5 }
   0x4   :  { %7 = vsyncpa [#allocation4], 0  ;;  %174 = vmatprep.subr.msk.bf16.mxu0 %vm173_vm2, %v172_v3  ;;  %v22_v8 = vld [vmem:[%s271_s0 + $0x8] sm:$0xff]  ;;  %s213_s1 = smov [#allocation3]  }
   0x5   :  { %177 = vmatpush3.bf16.xpose.msk.msra.mxu0 %vm173_vm2, %v172_v3  ;;  %s138_s21 = sshll.u32 %s213_s1, 4  ;;  %s139_s21 = int_to_ptr.vmem [resolvable:$true] %s138_s21 }
   0x6   :  { %180 = vmatprep.subr.msk.bf16.mxu0 %vm173_vm2, %v178_v7  ;;  %s188_s0 = scalar_lea.vmem %s139_s21, 256  ;;  %p193_p1 = scmp.lt.s32.totalorder %s139_s21, %s139_s21 }
   0x7   :  { %p189_p0 = scmp.ne.s32.totalorder %s139_s21, %s188_s0  ;;  %p194_p2 = scmp.lt.s32.totalorder %s188_s0, %s188_s0 }
   0x8   :  { %v20_v9 = vld [vmem:[#allocation2 + $0x8] sm:$0xff] }
   0x9   :  { %v19_v10 = vld [vmem:[#allocation2] sm:$0xff]  ;;  %p195_p3 = por %p194_p2, %p193_p1 }
   0xb   :  { %p196_p4 = pnand %p195_p3, %p189_p0 }
   0xd   :  { %183 = vmatpush3.bf16.xpose.msk.msra.mxu0 %vm173_vm2, %v178_v7 }
  0x14   :  { %170 = vmatmul.mubr.msk.f32.vlgmr.msra.gmra.mrb[0].mxu0 %vm27_vm0, %v22_v8 }
  0xe7   :  { %v171_v11 = vpop.f32.mrb[0].mxu0 }
  0xe8   :  { %v122_v12 = vadd.f32 %v171_v11, %v20_v9  ;;  %v112_v13 = vpop.f32.mrb[1].mxu0 }
  0xe9   :  { %v121_v14 = vadd.f32 %v112_v13, %v19_v10 }
  0xea   :  { %125 = vst.msk [vmem:[#allocation2 + $0x8] sm:$0xff] %vm16_vm1, %v122_v12 }
  0xeb   :  { %124 = vst.msk [vmem:[#allocation2] sm:$0xff] %vm16_vm1, %v121_v14 }
  0xf1   :  { %v130_v15 = vld [vmem:[#allocation2 + $0x8] sm:$0xff] }
  0xf2   :  { %v129_v16 = vld [vmem:[#allocation2] sm:$0xff]  ;;  %132 = vst.msk [vmem:[#allocation3 + $0x8] sm:$0xff] %vm16_vm1, %v130_v15 }
  0xf3   :  { %131 = vst.msk [vmem:[#allocation3] sm:$0xff] %vm16_vm1, %v129_v16 }
  0xf4   :  { %199 = shalt.err (!%p196_p4)
}
  0xf5   :  { %s200_s24 = scalar_lea.hbm %s273_s2, 256 }
  0xf6   :  { %p201_p5 = scmp.ne.s32.totalorder %s273_s2, %s200_s24  ;;  %p204_p6 = scmp.lt.u32.totalorder %s200_s24, %s273_s2 }
  0xf8   :  { %p206_p7 = pnand %p204_p6, %p201_p5 }
  0xfa   :  { %209 = shalt.err (!%p206_p7)
}
  0xfb   :  { %s214_s29 = smov 128   ;;  %s215_s30 = smov 8  }
  0xfc   :  { %144 = dma.vmem_to_hbm [thread:$0]  %s139_s21, 256, %s273_s2, [#allocation4], %s214_s29, %s214_s29, %s215_s30  }
  0xfd   :  { %210 = dma.done.wait [#allocation4], 256  }
  0xfe   :  { %211 = vsyncadd [#allocation4], 4294967040 }
  0xff   :  { %148 = vsyncpa [#allocation4], 1 }

</bundles_post_ra>
